<compile_context>
chip_gen: v7x
topology: tpu7x:2x2x1
jax: 0.10.0
libtpu: 0.0.40
codegen_flags: <defaults>
</compile_context>

<pallas_src>
import functools
import numbers
import string
from collections import defaultdict

import numpy as np
import jax
import jax.numpy as jnp
from jax import lax
from jax.experimental import pallas as pl
from jax.experimental.pallas import tpu as pltpu

ALL_CHARACTERS = string.printable
N_CHARACTERS = len(ALL_CHARACTERS)
CHAR_TO_ID = {c: i for i, c in enumerate(ALL_CHARACTERS)}
MEM_DIM = 128
NCH_PAD = 128            # char-table rows padded to one lane tile
B_BLK_MAX = 32           # LSTM batch rows per grid step
XG_DTYPE = jnp.bfloat16  # precomputed input-gate scratch dtype


def _bucket_pow2(n, minimum=8):
    n = max(int(n), 1)
    return max(minimum, 1 << (n - 1).bit_length())


# ---------------------------------------------------------------------------
# Module-level index maps (stable identities so compiled-kernel caching works)
# ---------------------------------------------------------------------------
def _im_row(i):
    return (i, 0)


def _im_const2(i):
    return (0, 0)


def _im_ids3(i):
    return (i, 0, 0)


def _im_agg_slab(i, cnt):
    return (i, 0)


def _im_agg_const(i, cnt):
    return (0, 0)


# ---------------------------------------------------------------------------
# Container aggregation: one grid step per container of a weight group
# ---------------------------------------------------------------------------
def _agg_group_kernel(cnt_ref, x_ref, w1_ref, b1_ref, w2_ref, b2_ref,
                      wo_ref, bo_ref, out_ref, max_scr):
    """cnt_ref : (C,) int32 SMEM (scalar prefetch) true #children per container
    x_ref   : (Npad, D) zero-padded children block of container i
    out_ref : (Cpad, D) resident output slab, written on the last grid step
    max_scr : (Cpad, D) per-container relu(max(embedder(children))) rows
    """
    i = pl.program_id(0)

    @pl.when(i == 0)
    def _():
        max_scr[...] = jnp.zeros_like(max_scr)

    x = x_ref[...]
    h1 = jnp.maximum(
        jnp.dot(x, w1_ref[...], preferred_element_type=jnp.float32) + b1_ref[...],
        0.0)
    h2 = jnp.dot(h1, w2_ref[...], preferred_element_type=jnp.float32) + b2_ref[...]
    rows = lax.broadcasted_iota(jnp.int32, h2.shape, 0)
    h2 = jnp.where(rows < cnt_ref[i], h2, -jnp.inf)            # mask padded rows
    max_scr[pl.ds(i, 1), :] = jnp.maximum(
        jnp.max(h2, axis=0, keepdims=True), 0.0)

    @pl.when(i == pl.num_programs(0) - 1)
    def _():
        # Output head batched over all containers of the group: one dense
        # (Cpad,128)@(128,128) matmul instead of C separate M=1 matmuls.
        out_ref[...] = jnp.maximum(
            jnp.dot(max_scr[...], wo_ref[...], preferred_element_type=jnp.float32)
            + bo_ref[...], 0.0)


@functools.lru_cache(maxsize=None)
def _get_agg_call(C, Npad, Cpad):
    D = MEM_DIM
    return jax.jit(pl.pallas_call(
        _agg_group_kernel,
        out_shape=jax.ShapeDtypeStruct((Cpad, D), jnp.float32),
        grid_spec=pltpu.PrefetchScalarGridSpec(
            num_scalar_prefetch=1,
            grid=(C,),
            in_specs=[
                pl.BlockSpec((Npad, D), _im_agg_slab),     # children slab
                pl.BlockSpec((D, D), _im_agg_const),       # w1 (VMEM resident)
                pl.BlockSpec((1, D), _im_agg_const),       # b1
                pl.BlockSpec((D, D), _im_agg_const),       # w2
                pl.BlockSpec((1, D), _im_agg_const),       # b2
                pl.BlockSpec((D, D), _im_agg_const),       # w_out
                pl.BlockSpec((1, D), _im_agg_const),       # b_out
            ],
            out_specs=pl.BlockSpec((Cpad, D), _im_agg_const),
            scratch_shapes=[pltpu.VMEM((Cpad, D), jnp.float32)],
        ),
        compiler_params=pltpu.CompilerParams(
            dimension_semantics=("arbitrary",)),
    ))


def _agg_group_forward(children_lists, emb, outp):
    """children_lists: one list of (1, D) child-state arrays per container."""
    C = len(children_lists)
    Npad = _bucket_pow2(max(len(k) for k in children_lists), minimum=8)
    Cpad = ((C + 7) // 8) * 8
    counts = np.zeros((C,), np.int32)
    pieces = []
    for ci, kids in enumerate(children_lists):
        counts[ci] = len(kids)
        pieces.extend(kids)
        if Npad > len(kids):
            pieces.append(jnp.zeros((Npad - len(kids), MEM_DIM), jnp.float32))
    slab = jnp.concatenate(pieces, axis=0)                     # (C*Npad, D)
    call = _get_agg_call(C, Npad, Cpad)
    return call(jnp.asarray(counts), slab,
                emb["w1"], emb["b1"], emb["w2"], emb["b2"],
                outp["w"], outp["b"])                          # (Cpad, D)


# ---------------------------------------------------------------------------
# Batched single-layer LSTM over char IDs
# ---------------------------------------------------------------------------
def _lstm_kernel(ids_ref, len_ref, tbl_ref, whh_ref, b_ref, hout_ref, xg_scr):
    """Gate order is [i, f, o, g] (columns permuted vs nn.LSTM).

    ids_ref : (1, T*B, 1) int32 char IDs, token order t-major then batch
    len_ref : (B, 1) int32 true sequence lengths (0 for padded rows)
    tbl_ref : (NCH_PAD, 4D) bf16 -- char_embedding @ W_ih folded per key
    whh_ref : (D, 4D) bf16
    b_ref   : (1, 4D) f32 (b_ih + b_hh)
    hout_ref: (B, D) f32 final hidden state per sequence
    xg_scr  : (T, B, 4D) bf16 precomputed input-gate activations
    """
    B = len_ref.shape[0]
    NCH = tbl_ref.shape[0]
    D = whh_ref.shape[0]
    TB = ids_ref.shape[1]
    T = TB // B

    # Char-ID -> one-hot -> folded table: the whole input projection is one
    # dense bf16 (T*B,128)@(128,512) matmul, hoisted out of the recurrence.
    ids = ids_ref[0]                                            # (T*B, 1)
    onehot = (ids == lax.broadcasted_iota(jnp.int32, (TB, NCH), 1)
              ).astype(jnp.bfloat16)
    xg = jnp.dot(onehot, tbl_ref[...],
                 preferred_element_type=jnp.float32) + b_ref[...]
    xg_scr[...] = xg.reshape(T, B, 4 * D).astype(XG_DTYPE)

    lens = len_ref[...]                                         # (B, 1) int32
    whh = whh_ref[...]                                          # bf16

    def step(t, carry):
        h, c = carry                                            # (B, D) f32 vregs
        gates = (xg_scr[t].astype(jnp.float32)
                 + jnp.dot(h.astype(jnp.bfloat16), whh,
                           preferred_element_type=jnp.float32))  # (B, 4D)
        sig = jax.nn.sigmoid(gates[:, :3 * D])                   # i | f | o fused
        i_g = sig[:, :D]
        f_g = sig[:, D:2 * D]
        o_g = sig[:, 2 * D:]
        g_g = jnp.tanh(gates[:, 3 * D:])
        c_new = f_g * c + i_g * g_g
        h_new = o_g * jnp.tanh(c_new)
        valid = t < lens                                         # (B,1) broadcast
        return jnp.where(valid, h_new, h), jnp.where(valid, c_new, c)

    h, _ = lax.fori_loop(
        0, T, step,
        (jnp.zeros((B, D), jnp.float32), jnp.zeros((B, D), jnp.float32)))
    hout_ref[...] = h


@functools.lru_cache(maxsize=None)
def _get_lstm_call(T, Bp, b_blk):
    D = MEM_DIM
    nb = Bp // b_blk
    # TODO(synk): for very long strings (T >= ~512) tile the time axis so the
    # xg scratch stays inside v7x's 32 MiB scoped / v5e's 16 MiB VMEM budget.
    return jax.jit(pl.pallas_call(
        _lstm_kernel,
        out_shape=jax.ShapeDtypeStruct((Bp, D), jnp.float32),
        grid_spec=pltpu.PrefetchScalarGridSpec(
            num_scalar_prefetch=0,
            grid=(nb,),
            in_specs=[
                pl.BlockSpec((1, T * b_blk, 1), _im_ids3),      # char ids int32
                pl.BlockSpec((b_blk, 1), _im_row),              # lengths
                pl.BlockSpec((NCH_PAD, 4 * D), _im_const2),     # E@W_ih (bf16)
                pl.BlockSpec((D, 4 * D), _im_const2),           # W_hh (bf16)
                pl.BlockSpec((1, 4 * D), _im_const2),           # bias (f32)
            ],
            out_specs=pl.BlockSpec((b_blk, D), _im_row),
            scratch_shapes=[pltpu.VMEM((T, b_blk, 4 * D), XG_DTYPE)],
        ),
        compiler_params=pltpu.CompilerParams(
            dimension_semantics=("parallel",)),
    ))


def _lstm_group_forward(items, rnn):
    """items: [(plan_idx, str), ...] sharing one weight key -> (Bp, D) hiddens."""
    B = len(items)
    T = _bucket_pow2(max(len(s) for _, s in items), minimum=8)
    Bp = _bucket_pow2(B, minimum=8)
    b_blk = min(B_BLK_MAX, Bp)     # nb >= 2 whenever B > B_BLK_MAX (v7x megacore)
    nb = Bp // b_blk
    ids = np.zeros((nb, T * b_blk, 1), np.int32)
    lens = np.zeros((Bp, 1), np.int32)
    for j, (_, s) in enumerate(items):
        blk, lane = divmod(j, b_blk)
        cid = np.asarray([CHAR_TO_ID.get(c, 0) for c in s], np.int32)
        ids[blk, np.arange(len(cid)) * b_blk + lane, 0] = cid
        lens[j, 0] = len(cid)
    call = _get_lstm_call(T, Bp, b_blk)
    return call(jnp.asarray(ids), jnp.asarray(lens),
                rnn["tbl"], rnn["whh"], rnn["b"])


# ---------------------------------------------------------------------------
# SetJSONNN replica (structure/recursion in Python, compute in Pallas)
# ---------------------------------------------------------------------------
class SetJSONNNPallas:
    def __init__(self, mem_dim=128, tie_weights_containers=False,
                 tie_weights_primitives=False, key=None):
        assert mem_dim == MEM_DIM
        self.mem_dim = mem_dim
        self.path_length = 1
        self.tie_containers = tie_weights_containers
        self.tie_primitives = tie_weights_primitives
        self._counter = 0

        # lazily created, keyed by canonical path (mirrors KeyDefaultDict)
        self.embedder = {}
        self.out = {}
        self.string_rnn = {}
        self.number_embeddings = {}
        self.number_stats = defaultdict(list)

        # nn.Embedding(N_CHARACTERS, mem_dim): standard normal init, padded to
        # NCH_PAD rows so it can be folded into each key's W_ih lookup table.
        enc = jax.random.normal(self._next_key(), (N_CHARACTERS, mem_dim),
                                jnp.float32)
        self.string_encoder = enc
        self._enc_pad = jnp.concatenate(
            [enc, jnp.zeros((NCH_PAD - N_CHARACTERS, mem_dim), jnp.float32)], 0)

    # -- deterministic parameter creation ------------------------------------
    def _next_key(self):
        k = jax.random.fold_in(jax.random.PRNGKey(0), self._counter)
        self._counter += 1
        return k

    def _uniform(self, shape, bound):
        return jax.random.uniform(self._next_key(), shape, jnp.float32,
                                  -bound, bound)

    def _get_embedder(self, key):
        if key not in self.embedder:
            b = 1.0 / np.sqrt(self.mem_dim)
            self.embedder[key] = {
                "w1": self._uniform((self.mem_dim, self.mem_dim), b),
                "b1": self._uniform((1, self.mem_dim), b),
                "w2": self._uniform((self.mem_dim, self.mem_dim), b),
                "b2": self._uniform((1, self.mem_dim), b),
            }
        return self.embedder[key]

    def _get_out(self, key):
        if key not in self.out:
            b = 1.0 / np.sqrt(self.mem_dim)
            self.out[key] = {
                "w": self._uniform((self.mem_dim, self.mem_dim), b),
                "b": self._uniform((1, self.mem_dim), b),
            }
        return self.out[key]

    def _get_string_rnn(self, key):
        if key not in self.string_rnn:
            bd = 1.0 / np.sqrt(self.mem_dim)
            # Gate order [i, f, o, g] (permuted vs nn.LSTM's [i,f,g,o]) so one
            # sigmoid covers a contiguous (B, 3D) slice; distributionally
            # identical for random init.
            wih = self._uniform((self.mem_dim, 4 * self.mem_dim), bd)
            whh = self._uniform((self.mem_dim, 4 * self.mem_dim), bd)
            # b_ih + b_hh folded into one bias (init-distribution differs
            # slightly from two separate PyTorch uniforms; numerically valid).
            bias = (self._uniform((1, 4 * self.mem_dim), bd)
                    + self._uniform((1, 4 * self.mem_dim), bd))
            # Fold the char embedding into the input projection: one (128, 4D)
            # lookup table gathered in-kernel via a one-hot matmul on char IDs.
            tbl = jnp.dot(self._enc_pad, wih).astype(jnp.bfloat16)
            self.string_rnn[key] = {"tbl": tbl,
                                    "whh": whh.astype(jnp.bfloat16),
                                    "b": bias}
        return self.string_rnn[key]

    def _get_number(self, key):
        if key not in self.number_embeddings:
            b = 1.0  # fan_in = 1
            self.number_embeddings[key] = {
                "w": self._uniform((1, self.mem_dim), b),
                "b": self._uniform((1, self.mem_dim), b),
            }
        return self.number_embeddings[key]

    # -- helpers ---------------------------------------------------------------
    def _canonical(self, path):
        return tuple("___list___" if isinstance(p, numbers.Number) else p
                     for p in path[-self.path_length:])

    # -- forward: plan (leaves + containers by level) -> batched kernels -------
    def forward(self, node):
        self._leaf_plan = []
        self._containers = []
        root = self._walk(node, ("___root___",))
        leaf_results = self._embed_leaves(self._leaf_plan)
        cont_results = [None] * len(self._containers)

        def state_of(handle):
            kind, i = handle
            return leaf_results[i] if kind == "leaf" else cont_results[i]

        # group containers by tree level, then by (embedder, out) weight pair
        by_level = defaultdict(lambda: defaultdict(list))
        for cid, c in enumerate(self._containers):
            by_level[c["level"]][(c["emb"], c["out"])].append(cid)

        for level in sorted(by_level):
            for (ek, ok), cids in by_level[level].items():
                emb = self._get_embedder(ek)
                outp = self._get_out(ok)
                groups = [[state_of(h) for h in self._containers[cid]["kids"]]
                          for cid in cids]
                rows = _agg_group_forward(groups, emb, outp)
                for j, cid in enumerate(cids):
                    cont_results[cid] = rows[j:j + 1, :]

        if root is None:
            return jnp.zeros((1, self.mem_dim), jnp.float32)
        return state_of(root)

    # -- JSON recursion (mirrors JSONNN.embed_node, building a batching plan) --
    def _walk(self, node, path):
        path = self._canonical(path) or ()
        if isinstance(node, dict):
            p = path if not self.tie_containers else ("___default___",)
            kids = []
            for name, child in node.items():
                h = self._walk(child, p + (name,))
                if h is not None:
                    kids.append(h)
            if not kids:
                return None
            canon = self._canonical(p) if not self.tie_containers else "___default___"
            # objects always use the default embedder MLP (reference behaviour)
            return self._add_container(kids, "___default___", canon)
        if isinstance(node, list):
            p = path if not self.tie_containers else ("___default___",)
            kids = []
            for i, child in enumerate(node):
                h = self._walk(child, p + (i,))
                if h is not None:
                    kids.append(h)
            if not kids:
                return None
            canon = self._canonical(p) if not self.tie_containers else "___default___"
            return self._add_container(kids, canon, canon)
        if isinstance(node, str):
            canon = self._canonical(path) if not self.tie_primitives else "___default___"
            idx = len(self._leaf_plan)
            self._leaf_plan.append(("str", canon, node))
            return ("leaf", idx)
        if isinstance(node, numbers.Number):
            canon = self._canonical(path) if not self.tie_primitives else "___default___"
            idx = len(self._leaf_plan)
            self._leaf_plan.append(("num", canon, node))
            return ("leaf", idx)
        return None  # unsupported types are skipped (reference behaviour)

    def _add_container(self, kids, emb_key, out_key):
        level = 1 + max([0] + [self._containers[cid]["level"]
                               for kind, cid in kids if kind == "cont"])
        self._containers.append(
            {"kids": kids, "emb": emb_key, "out": out_key, "level": level})
        return ("cont", len(self._containers) - 1)

    # -- leaves: batched per weight key -----------------------------------------
    def _embed_leaves(self, plan):
        results = [None] * len(plan)
        str_groups = defaultdict(list)
        num_groups = defaultdict(list)
        for idx, (kind, canon, val) in enumerate(plan):
            if kind == "str":
                if val == "":
                    results[idx] = jnp.zeros((1, self.mem_dim), jnp.float32)
                else:
                    str_groups[canon].append((idx, val))
            else:
                num_groups[canon].append((idx, val))

        # strings: one batched LSTM kernel call per weight key
        for canon, items in str_groups.items():
            rnn = self._get_string_rnn(canon)
            h = _lstm_group_forward(items, rnn)
            for j, (idx, _) in enumerate(items):
                results[idx] = h[j:j + 1, :]

        # numbers: running stats on host (reference semantics), batched FMA
        for canon, items in num_groups.items():
            p = self._get_number(canon)
            normed = []
            for _, num in items:                      # traversal order preserved
                stats = self.number_stats[canon]
                if len(stats) < 100:
                    stats.append(num)
                v = float(num) - float(np.mean(stats))
                if len(stats) > 3:
                    std = float(np.std(stats))
                    if not np.allclose(std, 0.0):
                        v = v / std
                normed.append(v)
            nums = jnp.asarray(normed, jnp.float32)[:, None]   # (B, 1)
            emb = nums * p["w"] + p["b"]                       # (B, D)
            for j, (idx, _) in enumerate(items):
                results[idx] = emb[j:j + 1, :]
        return results


# ----------------------------------------------------------------------------
if __name__ == "__main__":
    model = SetJSONNNPallas(mem_dim=MEM_DIM, key=jax.random.PRNGKey(0))

    # Small deterministic JSON tree exercising strings, numbers, arrays,
    # objects, a multi-string list (batched LSTM) and two sibling lists that
    # share a weight key (batched container aggregation).
    example = {
        "name": "hello",
        "value": 3.5,
        "items": [1.0, 2.0, 3.0, 4.0],
        "meta": {"id": 7, "tag": "abc"},
        "tags": ["alpha", "beta", "gamma"],
        "pairs": [[1.0, 2.0], [3.0, 4.0]],
    }

    out = model.forward(example)
    out = jax.block_until_ready(out)

    assert out.shape == (1, MEM_DIM), out.shape
    assert bool(jnp.all(jnp.isfinite(out)))
    print("KERNEL_OK")
</pallas_src>

<mosaic_0001>
module attributes {stable_mosaic.version = 11 : i64} {
  func.func @_lstm_kernel(%arg0: i32, %arg1: memref<1x64x1xi32, #tpu.memory_space<vmem>>, %arg2: memref<8x1xi32, #tpu.memory_space<vmem>>, %arg3: memref<128x512xbf16, #tpu.memory_space<vmem>>, %arg4: memref<128x512xbf16, #tpu.memory_space<vmem>>, %arg5: memref<1x512xf32, #tpu.memory_space<vmem>>, %arg6: memref<8x128xf32, #tpu.memory_space<vmem>>, %arg7: memref<8x8x512xbf16, #tpu.memory_space<vmem>>) attributes {dimension_semantics = [#tpu.dimension_semantics<parallel>], iteration_bounds = array<i64: 1>, scalar_prefetch = 0 : i64, scratch_operands = 1 : i64, tpu.core_type = #tpu.core_type<tc>, window_params = [{transform_indices = @transform_0, window_bounds = array<i64: 1, 64, 1>}, {transform_indices = @transform_1, window_bounds = array<i64: 8, 1>}, {pipeline_mode = #tpu.pipeline_mode<synchronous>, transform_indices = @transform_2, window_bounds = array<i64: 128, 512>}, {pipeline_mode = #tpu.pipeline_mode<synchronous>, transform_indices = @transform_3, window_bounds = array<i64: 128, 512>}, {pipeline_mode = #tpu.pipeline_mode<synchronous>, transform_indices = @transform_4, window_bounds = array<i64: 1, 512>}, {transform_indices = @transform_5, window_bounds = array<i64: 8, 128>}]} {
    %c0 = arith.constant 0 : index
    %c0_0 = arith.constant 0 : index
    %c0_1 = arith.constant 0 : index
    %0 = vector.load %arg1[%c0, %c0_0, %c0_1] : memref<1x64x1xi32, #tpu.memory_space<vmem>>, vector<1x64x1xi32>
    %1 = vector.shape_cast %0 : vector<1x64x1xi32> to vector<64x1xi32>
    %2 = tpu.iota {dimensions = array<i32: 1>} : vector<64x128xi32>
    %3 = vector.broadcast %1 : vector<64x1xi32> to vector<64x128xi32>
    %4 = arith.cmpi eq, %3, %2 : vector<64x128xi32>
    %5 = arith.extui %4 : vector<64x128xi1> to vector<64x128xi32>
    %6 = arith.sitofp %5 : vector<64x128xi32> to vector<64x128xf32>
    %7 = arith.truncf %6 : vector<64x128xf32> to vector<64x128xbf16>
    %c0_2 = arith.constant 0 : index
    %c0_3 = arith.constant 0 : index
    %8 = vector.load %arg3[%c0_2, %c0_3] : memref<128x512xbf16, #tpu.memory_space<vmem>>, vector<128x512xbf16>
    %cst = arith.constant dense<0.000000e+00> : vector<64x512xf32>
    %9 = tpu.matmul %7, %8, %cst {dimension_numbers = #tpu.dot_dimension_numbers<[1], [0], [0], [1], [0, 0, 1, 1], [], []>} : vector<64x128xbf16>, vector<128x512xbf16>, vector<64x512xf32> -> vector<64x512xf32>
    %c0_4 = arith.constant 0 : index
    %c0_5 = arith.constant 0 : index
    %10 = vector.load %arg5[%c0_4, %c0_5] : memref<1x512xf32, #tpu.memory_space<vmem>>, vector<1x512xf32>
    %11 = vector.broadcast %10 : vector<1x512xf32> to vector<64x512xf32>
    %12 = arith.addf %9, %11 : vector<64x512xf32>
    %13 = vector.shape_cast %12 : vector<64x512xf32> to vector<8x8x512xf32>
    %14 = arith.truncf %13 : vector<8x8x512xf32> to vector<8x8x512xbf16>
    %c0_6 = arith.constant 0 : index
    %c0_7 = arith.constant 0 : index
    %c0_8 = arith.constant 0 : index
    %15 = vector.load %arg7[%c0_6, %c0_7, %c0_8] : memref<8x8x512xbf16, #tpu.memory_space<vmem>>, vector<8x8x512xbf16>
    tpu.vector_store %arg7[%c0_6, %c0_7, %c0_8], %14 {strides = array<i32>} : memref<8x8x512xbf16, #tpu.memory_space<vmem>>, vector<8x8x512xbf16>,
    %c0_9 = arith.constant 0 : index
    %c0_10 = arith.constant 0 : index
    %16 = vector.load %arg2[%c0_9, %c0_10] : memref<8x1xi32, #tpu.memory_space<vmem>>, vector<8x1xi32>
    %c0_11 = arith.constant 0 : index
    %c0_12 = arith.constant 0 : index
    %17 = vector.load %arg4[%c0_11, %c0_12] : memref<128x512xbf16, #tpu.memory_space<vmem>>, vector<128x512xbf16>
    %cst_13 = arith.constant 0.000000e+00 : f32
    %18 = vector.broadcast %cst_13 : f32 to vector<8x128xf32>
    %cst_14 = arith.constant 0.000000e+00 : f32
    %19 = vector.broadcast %cst_14 : f32 to vector<8x128xf32>
    %c0_i32 = arith.constant 0 : i32
    %c8_i32 = arith.constant 8 : i32
    %20 = arith.addi %c0_i32, %c8_i32 : i32
    %c1_i32 = arith.constant 1 : i32
    %21:2 = scf.for %arg8 = %c0_i32 to %20 step %c1_i32 iter_args(%arg9 = %18, %arg10 = %19) -> (vector<8x128xf32>, vector<8x128xf32>)  : i32 {
      %23 = arith.index_cast %arg8 : i32 to index
      %c0_18 = arith.constant 0 : index
      %c0_19 = arith.constant 0 : index
      %24 = vector.load %arg7[%23, %c0_18, %c0_19] : memref<8x8x512xbf16, #tpu.memory_space<vmem>>, vector<1x8x512xbf16>
      %25 = vector.shape_cast %24 : vector<1x8x512xbf16> to vector<8x512xbf16>
      %26 = arith.extf %25 : vector<8x512xbf16> to vector<8x512xf32>
      %27 = arith.truncf %arg9 : vector<8x128xf32> to vector<8x128xbf16>
      %cst_20 = arith.constant dense<0.000000e+00> : vector<8x512xf32>
      %28 = tpu.matmul %27, %17, %cst_20 {dimension_numbers = #tpu.dot_dimension_numbers<[1], [0], [0], [1], [0, 0, 1, 1], [], []>} : vector<8x128xbf16>, vector<128x512xbf16>, vector<8x512xf32> -> vector<8x512xf32>
      %29 = arith.addf %26, %28 : vector<8x512xf32>
      %30 = vector.extract_strided_slice %29 {offsets = [0, 0], sizes = [8, 384], strides = [1, 1]} : vector<8x512xf32> to vector<8x384xf32>
      %31 = arith.negf %30 : vector<8x384xf32>
      %32 = math.exp %31 : vector<8x384xf32>
      %cst_21 = arith.constant 1.000000e+00 : f32
      %33 = vector.broadcast %cst_21 : f32 to vector<8x384xf32>
      %34 = arith.addf %33, %32 : vector<8x384xf32>
      %35 = arith.divf %33, %34 : vector<8x384xf32>
      %36 = vector.extract_strided_slice %35 {offsets = [0, 0], sizes = [8, 128], strides = [1, 1]} : vector<8x384xf32> to vector<8x128xf32>
      %37 = vector.extract_strided_slice %35 {offsets = [0, 128], sizes = [8, 128], strides = [1, 1]} : vector<8x384xf32> to vector<8x128xf32>
      %38 = vector.extract_strided_slice %35 {offsets = [0, 256], sizes = [8, 128], strides = [1, 1]} : vector<8x384xf32> to vector<8x128xf32>
      %39 = vector.extract_strided_slice %29 {offsets = [0, 384], sizes = [8, 128], strides = [1, 1]} : vector<8x512xf32> to vector<8x128xf32>
      %40 = math.tanh %39 : vector<8x128xf32>
      %41 = arith.mulf %37, %arg10 : vector<8x128xf32>
      %42 = arith.mulf %36, %40 : vector<8x128xf32>
      %43 = arith.addf %41, %42 : vector<8x128xf32>
      %44 = math.tanh %43 : vector<8x128xf32>
      %45 = arith.mulf %38, %44 : vector<8x128xf32>
      %46 = vector.broadcast %arg8 : i32 to vector<8x1xi32>
      %47 = arith.cmpi slt, %46, %16 : vector<8x1xi32>
      %48 = vector.shape_cast %47 : vector<8x1xi1> to vector<8x1xi1>
      %49 = vector.broadcast %48 : vector<8x1xi1> to vector<8x128xi1>
      %50 = arith.select %49, %45, %arg9 : vector<8x128xi1>, vector<8x128xf32>
      %51 = vector.shape_cast %47 : vector<8x1xi1> to vector<8x1xi1>
      %52 = vector.broadcast %51 : vector<8x1xi1> to vector<8x128xi1>
      %53 = arith.select %52, %43, %arg10 : vector<8x128xi1>, vector<8x128xf32>
      scf.yield %50, %53 : vector<8x128xf32>, vector<8x128xf32>
    }
    %c8_i32_15 = arith.constant 8 : i32
    %c0_16 = arith.constant 0 : index
    %c0_17 = arith.constant 0 : index
    %22 = vector.load %arg6[%c0_16, %c0_17] : memref<8x128xf32, #tpu.memory_space<vmem>>, vector<8x128xf32>
    tpu.vector_store %arg6[%c0_16, %c0_17], %21#0 {strides = array<i32>} : memref<8x128xf32, #tpu.memory_space<vmem>>, vector<8x128xf32>,
    return
  }
  func.func @transform_0(%arg0: i32) -> (i32, i32, i32) {
    %c0_i32 = arith.constant 0 : i32
    %c0_i32_0 = arith.constant 0 : i32
    %c0_i32_1 = arith.constant 0 : i32
    return %arg0, %c0_i32, %c0_i32_0 : i32, i32, i32
  }
  func.func @transform_1(%arg0: i32) -> (i32, i32) {
    %c0_i32 = arith.constant 0 : i32
    %c0_i32_0 = arith.constant 0 : i32
    return %arg0, %c0_i32 : i32, i32
  }
  func.func @transform_2(%arg0: i32) -> (i32, i32) {
    %c0_i32 = arith.constant 0 : i32
    %c0_i32_0 = arith.constant 0 : i32
    %c0_i32_1 = arith.constant 0 : i32
    return %c0_i32, %c0_i32_0 : i32, i32
  }
  func.func @transform_3(%arg0: i32) -> (i32, i32) {
    %c0_i32 = arith.constant 0 : i32
    %c0_i32_0 = arith.constant 0 : i32
    %c0_i32_1 = arith.constant 0 : i32
    return %c0_i32, %c0_i32_0 : i32, i32
  }
  func.func @transform_4(%arg0: i32) -> (i32, i32) {
    %c0_i32 = arith.constant 0 : i32
    %c0_i32_0 = arith.constant 0 : i32
    %c0_i32_1 = arith.constant 0 : i32
    return %c0_i32, %c0_i32_0 : i32, i32
  }
  func.func @transform_5(%arg0: i32) -> (i32, i32) {
    %c0_i32 = arith.constant 0 : i32
    %c0_i32_0 = arith.constant 0 : i32
    return %arg0, %c0_i32 : i32, i32
  }
}

</mosaic_0001>

<bundles_post_ra>
// kernel: tpu_custom_call.1
= control target key start
LH: loop header
LB: loop body
LE: loop exit
PB: predicated region body
PF: predicated region fallthrough
CT: control target
= control target key end

     0   :  { %10 = vsyncpa [#allocation4], 0  ;;  %s1611_s0 = inlined_call_operand.vmem [shape: s32[1,64,1], index: 0, kind: input, shape index: {}]   ;;  %s1612_s1 = inlined_call_operand.vmem [shape: s32[8,1], index: 1, kind: input, shape index: {}]   ;;  %s1613_s2 = inlined_call_operand.hbm [shape: bf16[128,512], index: 2, kind: input, shape index: {}]   ;;  %s1614_s3 = inlined_call_operand.hbm [shape: bf16[128,512], index: 3, kind: input, shape index: {}]   ;;  %s1615_s4 = inlined_call_operand.vmem [shape: f32[1,512], index: 4, kind: input, shape index: {}]   ;;  %s1616_s5 = inlined_call_operand.hbm [shape: f32[8,128], index: 5, kind: output, shape index: {}]  }
   0x1   :  { %11 = vsyncpa [#allocation7], 0 }
   0x2   :  { %12 = vsyncpa [#allocation5], 0  ;;  %s1297_s18 = smov [#allocation3]   ;;  %s1201_s22 = scalar_lea.hbm %s1613_s2, 4096 }
   0x3   :  { %s22_s19 = sshll.u32 %s1297_s18, 4  ;;  %p1202_p0 = scmp.ne.s32.totalorder %s1613_s2, %s1201_s22  ;;  %s23_s19 = int_to_ptr.vmem [resolvable:$true] %s22_s19 }
   0x4   :  { %p1205_p1 = scmp.lt.u32.totalorder %s1201_s22, %s1613_s2 }
   0x6   :  { %p1207_p2 = pnand %p1205_p1, %p1202_p0 }
   0x8   :  { %1210 = shalt.err (!%p1207_p2)
}
   0x9   :  { %s1211_s27 = scalar_lea.vmem %s23_s19, 4096  ;;  %p1216_p4 = scmp.lt.s32.totalorder %s23_s19, %s23_s19 }
   0xa   :  { %p1212_p3 = scmp.ne.s32.totalorder %s23_s19, %s1211_s27  ;;  %p1217_p5 = scmp.lt.s32.totalorder %s1211_s27, %s1211_s27 }
   0xc   :  { %p1218_p6 = por %p1217_p5, %p1216_p4 }
   0xe   :  { %p1219_p7 = pnand %p1218_p6, %p1212_p3 }
  0x10   :  { %1222 = shalt.err (!%p1219_p7)
}
  0x11   :  { %s1298_s28 = smov 256   ;;  %s1299_s29 = smov 16  }
  0x12   :  { %28 = dma.hbm_to_vmem [thread:$0]  %s1613_s2, 4096, %s23_s19, [#allocation4], %s1298_s28, %s1298_s28, %s1299_s29  }
  0x13   :  { %s1300_s7 = smov [#allocation6]   ;;  %s1223_s11 = scalar_lea.hbm %s1614_s3, 4096 }
  0x14   :  { %s34_s8 = sshll.u32 %s1300_s7, 4  ;;  %p1224_p8 = scmp.ne.s32.totalorder %s1614_s3, %s1223_s11  ;;  %s35_s8 = int_to_ptr.vmem [resolvable:$true] %s34_s8 }
  0x15   :  { %p1227_p9 = scmp.lt.u32.totalorder %s1223_s11, %s1614_s3 }
  0x17   :  { %p1229_p10 = pnand %p1227_p9, %p1224_p8 }
  0x19   :  { %1232 = shalt.err (!%p1229_p10)
}
  0x1a   :  { %s1233_s16 = scalar_lea.vmem %s35_s8, 4096  ;;  %p1238_p12 = scmp.lt.s32.totalorder %s35_s8, %s35_s8 }
  0x1b   :  { %p1234_p11 = scmp.ne.s32.totalorder %s35_s8, %s1233_s16  ;;  %p1239_p13 = scmp.lt.s32.totalorder %s1233_s16, %s1233_s16 }
  0x1d   :  { %p1240_p0 = por %p1239_p13, %p1238_p12 }
  0x1f   :  { %p1241_p1 = pnand %p1240_p0, %p1234_p11 }
  0x21   :  { %1244 = shalt.err (!%p1241_p1)
}
  0x22   :  { %40 = dma.hbm_to_vmem [thread:$0]  %s1614_s3, 4096, %s35_s8, [#allocation7], %s1298_s28, %s1298_s28, %s1299_s29  }
  0x23   :  { %1279 = dma.done.wait [#allocation4], 4096  }
  0x24   :  { %1280 = vsyncadd [#allocation4], 4294963200 }
  0x25   :  { %1281 = dma.done.wait [#allocation7], 4096  }
  0x26   :  { %1282 = vsyncadd [#allocation7], 4294963200  ;;  %v1301_v0 = vmov 0   ;;  %v1366_v1 = vld [vmem:[%s1612_s1] sm:$0xff]  ;;  %v1370_v3 = vld [vmem:[#allocation6 + $0x8] sm:$0xff] }
  0x27   :  { %1135 = vset.pattern.permute.xlu1 %v1301_v0  ;;  %1134 = vset.pattern.permute.xlu0 %v1301_v0  ;;  %v1368_v2 = vld [vmem:[#allocation6] sm:$0xff]  ;;  %v1372_v4 = vld [vmem:[#allocation6 + $0x10] sm:$0xff]  ;;  %v1374_v5 = vld [vmem:[#allocation6 + $0x18] sm:$0xff] }
  0x28   :  { %358 = vmatprep.mubr.bf16.mxu0 %v1301_v0  ;;  %431 = vmatprep.mubr.bf16.mxu1 %v1301_v0  ;;  %v1376_v6 = vld [vmem:[#allocation6 + $0x20] sm:$0xff]  ;;  %v1378_v7 = vld [vmem:[#allocation6 + $0x28] sm:$0xff]  ;;  %v1380_v8 = vld [vmem:[#allocation6 + $0x30] sm:$0xff] }
  0x29   :  { %v1382_v9 = vld [vmem:[#allocation6 + $0x38] sm:$0xff]  ;;  %v1384_v10 = vld [vmem:[#allocation6 + $0x40] sm:$0xff]  ;;  %v1386_v11 = vld [vmem:[#allocation6 + $0x48] sm:$0xff] }
  0x2a   :  { %v1388_v12 = vld [vmem:[#allocation6 + $0x50] sm:$0xff]  ;;  %v1390_v13 = vld [vmem:[#allocation6 + $0x58] sm:$0xff]  ;;  %v1392_v14 = vld [vmem:[#allocation6 + $0x60] sm:$0xff] }
  0x2b   :  { %v1394_v15 = vld [vmem:[#allocation6 + $0x68] sm:$0xff]  ;;  %v1396_v16 = vld [vmem:[#allocation6 + $0x70] sm:$0xff]  ;;  %v1398_v17 = vld [vmem:[#allocation6 + $0x78] sm:$0xff] }
  0x2c   :  { %v1400_v18 = vld [vmem:[#allocation6 + $0x80] sm:$0xff]  ;;  %v1402_v19 = vld [vmem:[#allocation6 + $0x88] sm:$0xff]  ;;  %v1404_v20 = vld [vmem:[#allocation6 + $0x90] sm:$0xff] }
  0x2d   :  { %v1406_v21 = vld [vmem:[#allocation6 + $0x98] sm:$0xff]  ;;  %v1408_v22 = vld [vmem:[#allocation6 + $0xa0] sm:$0xff]  ;;  %v1410_v23 = vld [vmem:[#allocation6 + $0xa8] sm:$0xff] }
  0x2e   :  { %v1412_v24 = vld [vmem:[#allocation6 + $0xb0] sm:$0xff]  ;;  %v1414_v25 = vld [vmem:[#allocation6 + $0xb8] sm:$0xff]  ;;  %v1416_v26 = vld [vmem:[#allocation6 + $0xc0] sm:$0xff] }
  0x2f   :  { %v1418_v27 = vld [vmem:[#allocation6 + $0xc8] sm:$0xff]  ;;  %v1420_v28 = vld [vmem:[#allocation6 + $0xd0] sm:$0xff]  ;;  %v1422_v29 = vld [vmem:[#allocation6 + $0xd8] sm:$0xff] }
  0x30   :  { %v1424_v30 = vld [vmem:[#allocation6 + $0xe0] sm:$0xff]  ;;  %v1426_v31 = vld [vmem:[#allocation6 + $0xe8] sm:$0xff]  ;;  %v1428_v32 = vld [vmem:[#allocation6 + $0xf0] sm:$0xff] }
  0x31   :  { %v1430_v33 = vld [vmem:[#allocation6 + $0xf8] sm:$0xff]  ;;  %v52_v34 = vld [vmem:[%s1611_s0 + $0x10] sm:$0xff]  ;;  %v50_v35 = vld [vmem:[%s1611_s0] sm:$0xff] }
  0x32   :  { %67 = vperm.xlu1 %1135, %v52_v34   ;;  %61 = vperm.xlu0 %1134, %v50_v35   ;;  %v53_v36 = vld [vmem:[%s1611_s0 + $0x18] sm:$0xff]  ;;  %v51_v37 = vld [vmem:[%s1611_s0 + $0x8] sm:$0xff]  ;;  %v1136_v38 = vld [vmem:[#allocation3 + $0x4] ss:$16 sps:$4 sm:$0xff]  }
  0x33   :  { %v55_v39 = vld [vmem:[%s1611_s0 + $0x28] sm:$0xff]  ;;  %v54_v40 = vld [vmem:[%s1611_s0 + $0x20] sm:$0xff]  ;;  %326 = vmatprep.subr.bf16.mxu0 %v1136_v38  ;;  %v57_v48 = vld [vmem:[%s1611_s0 + $0x38] sm:$0xff] }
  0x34   :  { %v1138_v41 = vld [vmem:[#allocation3 + $0xc] ss:$16 sps:$4 sm:$0xff]   ;;  %v1140_v42 = vld [vmem:[#allocation3] ss:$16 sps:$4 sm:$0xff]   ;;  %v1141_v43 = vld [vmem:[#allocation3 + $0x8] ss:$16 sps:$4 sm:$0xff]  }
  0x35   :  { %399 = vmatprep.subr.bf16.mxu1 %v1138_v41  ;;  %v1142_v44 = vld [vmem:[#allocation3 + $0x24] ss:$16 sps:$4 sm:$0xff]   ;;  %327 = vmatpush1.bf16.msra.mxu0 %v1140_v42  ;;  %v1144_v45 = vld [vmem:[#allocation3 + $0x2c] ss:$16 sps:$4 sm:$0xff]   ;;  %v1146_v46 = vld [vmem:[#allocation3 + $0x20] ss:$16 sps:$4 sm:$0xff]  }
  0x36   :  { %70 = vperm.xlu1 %1135, %v53_v36   ;;  %64 = vperm.xlu0 %1134, %v51_v37   ;;  %v1147_v47 = vld [vmem:[#allocation3 + $0x28] ss:$16 sps:$4 sm:$0xff]   ;;  %v1148_v49 = vld [vmem:[#allocation3 + $0x44] ss:$16 sps:$4 sm:$0xff]   ;;  %v1150_v50 = vld [vmem:[#allocation3 + $0x4c] ss:$16 sps:$4 sm:$0xff]  }
  0x37   :  { %400 = vmatpush1.bf16.msra.mxu1 %v1141_v43  ;;  %328 = vmatprep.subr.bf16.mxu0 %v1142_v44  ;;  %v56_v51 = vld [vmem:[%s1611_s0 + $0x30] sm:$0xff]  ;;  %v1153_v53 = vld [vmem:[#allocation3 + $0x48] ss:$16 sps:$4 sm:$0xff]   ;;  %v1156_v55 = vld [vmem:[#allocation3 + $0x6c] ss:$16 sps:$4 sm:$0xff]   ;;  %v58_v44 = vlaneseq }
  0x38   :  { %401 = vmatprep.subr.bf16.mxu1 %v1144_v45  ;;  %v1152_v52 = vld [vmem:[#allocation3 + $0x40] ss:$16 sps:$4 sm:$0xff]   ;;  %v1154_v54 = vld [vmem:[#allocation3 + $0x64] ss:$16 sps:$4 sm:$0xff]   ;;  %v1159_v57 = vld [vmem:[#allocation3 + $0x68] ss:$16 sps:$4 sm:$0xff]  }
  0x39   :  { %329 = vmatpush1.bf16.msra.mxu0 %v1146_v46  ;;  %v1158_v56 = vld [vmem:[#allocation3 + $0x60] ss:$16 sps:$4 sm:$0xff]   ;;  %v1160_v58 = vld [vmem:[#allocation3 + $0x84] ss:$16 sps:$4 sm:$0xff]   ;;  %v1162_v59 = vld [vmem:[#allocation3 + $0x8c] ss:$16 sps:$4 sm:$0xff]  }
  0x3a   :  { %76 = vperm.xlu1 %1135, %v55_v39   ;;  %73 = vperm.xlu0 %1134, %v54_v40   ;;  %v1164_v60 = vld [vmem:[#allocation3 + $0x80] ss:$16 sps:$4 sm:$0xff]   ;;  %v1165_v61 = vld [vmem:[#allocation3 + $0x88] ss:$16 sps:$4 sm:$0xff]   ;;  %v1166_v62 = vld [vmem:[#allocation3 + $0xa4] ss:$16 sps:$4 sm:$0xff]  }
  0x3b   :  { %402 = vmatpush1.bf16.msra.mxu1 %v1147_v47  ;;  %330 = vmatprep.subr.bf16.mxu0 %v1148_v49  ;;  %v1168_v63 = vld [vmem:[#allocation3 + $0xac] ss:$16 sps:$4 sm:$0xff]   ;;  %v1170_v34 = vld [vmem:[#allocation3 + $0xa0] ss:$16 sps:$4 sm:$0xff]   ;;  %v1171_v35 = vld [vmem:[#allocation3 + $0xa8] ss:$16 sps:$4 sm:$0xff]  }
  0x3c   :  { %403 = vmatprep.subr.bf16.mxu1 %v1150_v50  ;;  %v1172_v36 = vld [vmem:[#allocation3 + $0xc4] ss:$16 sps:$4 sm:$0xff]   ;;  %v1174_v37 = vld [vmem:[#allocation3 + $0xcc] ss:$16 sps:$4 sm:$0xff]   ;;  %v1176_v38 = vld [vmem:[#allocation3 + $0xc0] ss:$16 sps:$4 sm:$0xff]  }
  0x3d   :  { %331 = vmatpush1.bf16.msra.mxu0 %v1152_v52  ;;  %v1177_v39 = vld [vmem:[#allocation3 + $0xc8] ss:$16 sps:$4 sm:$0xff]   ;;  %v1178_v40 = vld [vmem:[#allocation3 + $0xe4] ss:$16 sps:$4 sm:$0xff]   ;;  %v1180_v41 = vld [vmem:[#allocation3 + $0xec] ss:$16 sps:$4 sm:$0xff]  }
  0x3e   :  { %82 = vperm.xlu1 %1135, %v57_v48   ;;  %79 = vperm.xlu0 %1134, %v56_v51   ;;  %v1182_v42 = vld [vmem:[#allocation3 + $0xe0] ss:$16 sps:$4 sm:$0xff]   ;;  %v1183_v43 = vld [vmem:[#allocation3 + $0xe8] ss:$16 sps:$4 sm:$0xff]   ;;  %v59_v46 = vand.u32 127, %v58_v44 }
  0x3f   :  { %404 = vmatpush1.bf16.msra.mxu1 %v1153_v53  ;;  %332 = vmatprep.subr.bf16.mxu0 %v1154_v54  ;;  %v1302_v49 = vmov 1.0|1.0  }
  0x40   :  { %405 = vmatprep.subr.bf16.mxu1 %v1156_v55  ;;  %v147_v55 = vshrl.u32 %v58_v44, 7 }
  0x41   :  { %333 = vmatpush1.bf16.msra.mxu0 %v1158_v56 }
  0x42   :  { %334 = vmatprep.subr.bf16.mxu0 %v1160_v58  ;;  %v148_v56 = vsub.s32 0, %v147_v55  ;;  %v144_v58 = vld [vmem:[%s1615_s4] sm:$0xf]  ;;  %s1509_s4 = smov 0  }
  0x43   :  { %406 = vmatpush1.bf16.msra.mxu1 %v1159_v57  ;;  %v156_v57 = vsub.s32 2, %v147_v55 }
  0x44   :  { %407 = vmatprep.subr.bf16.mxu1 %v1162_v59  ;;  %v152_v59 = vsub.s32 1, %v147_v55 }
  0x45   :  { %335 = vmatpush1.bf16.msra.mxu0 %v1164_v60  ;;  %v160_v60 = vsub.s32 3, %v147_v55 }
  0x46   :  { %336 = vmatprep.subr.bf16.mxu0 %v1166_v62  ;;  %v1467_v62 = vrot.slane %v144_v58, %v156_v57 }
  0x47   :  { %408 = vmatpush1.bf16.msra.mxu1 %v1165_v61  ;;  %v1465_v61 = vrot.slane %v144_v58, %v148_v56 }
  0x48   :  { %409 = vmatprep.subr.bf16.mxu1 %v1168_v63  ;;  %v1469_v63 = vrot.slane %v144_v58, %v152_v59 }
  0x49   :  { %337 = vmatpush1.bf16.msra.mxu0 %v1170_v34 }
  0x4a   :  { %338 = vmatprep.subr.bf16.mxu0 %v1172_v36 }
  0x4b   :  { %410 = vmatpush1.bf16.msra.mxu1 %v1171_v35 }
  0x4c   :  { %411 = vmatprep.subr.bf16.mxu1 %v1174_v37 }
  0x4d   :  { %339 = vmatpush1.bf16.msra.mxu0 %v1176_v38 }
  0x4e   :  { %340 = vmatprep.subr.bf16.mxu0 %v1178_v40 }
  0x4f   :  { %412 = vmatpush1.bf16.msra.mxu1 %v1177_v39 }
  0x50   :  { %413 = vmatprep.subr.bf16.mxu1 %v1180_v41 }
  0x51   :  { %341 = vmatpush1.bf16.msra.mxu0 %v1182_v42 }
  0x53   :  { %414 = vmatpush1.bf16.msra.mxu1 %v1183_v43 }
  0xb1   :  { %v62_v45 = vpop.permute.xlu0 %61  ;;  %v68_v48 = vpop.permute.xlu1 %67 }
  0xb2   :  { %vm84_vm1 = vcmp.eq.s32.totalorder %v62_v45, %v59_v46  ;;  %vm86_vm3 = vcmp.eq.s32.totalorder %v68_v48, %v59_v46 }
  0xb5   :  { %v65_v47 = vpop.permute.xlu0 %64  ;;  %v71_v50 = vpop.permute.xlu1 %70 }
  0xb6   :  { %vm85_vm0 = vcmp.eq.s32.totalorder %v65_v47, %v59_v46  ;;  %vm87_vm4 = vcmp.eq.s32.totalorder %v71_v50, %v59_v46 }
  0xb7   :  { %vm1016_vm2 = vmpackc.low %vm85_vm0, %vm84_vm1 }
  0xb8   :  { %1017 = vmatmul.mubr.msk.bf16.vlgmr.msra.gmra.mrb[0].mxu0 %vm1016_vm2, %v1302_v49  ;;  %1025 = vmatmul.mubr.msk.bf16.vlgmr.msra.gmra.mrb[0].mxu1 %vm1016_vm2, %v1302_v49  ;;  %vm1018_vm5 = vmpackc.low %vm87_vm4, %vm86_vm3 }
  0xb9   :  { %368 = vmatprep.mubr.bf16.mxu0 %v1301_v0  ;;  %441 = vmatprep.mubr.bf16.mxu1 %v1301_v0  ;;  %v77_v51 = vpop.permute.xlu1 %76  ;;  %v74_v52 = vpop.permute.xlu0 %73 }
  0xba   :  { %vm89_vm6 = vcmp.eq.s32.totalorder %v77_v51, %v59_v46  ;;  %vm88_vm7 = vcmp.eq.s32.totalorder %v74_v52, %v59_v46 }
  0xbb   :  { %vm1020_vm8 = vmpackc.low %vm89_vm6, %vm88_vm7 }
  0xbd   :  { %v83_v53 = vpop.permute.xlu1 %82  ;;  %v80_v54 = vpop.permute.xlu0 %79 }
  0xbe   :  { %vm91_vm9 = vcmp.eq.s32.totalorder %v83_v53, %v59_v46  ;;  %vm90_vm10 = vcmp.eq.s32.totalorder %v80_v54, %v59_v46 }
  0xbf   :  { %vm1022_vm11 = vmpackc.low %vm91_vm9, %vm90_vm10 }
  0xc0   :  { %1019 = vmatmul.mubr.msk.bf16.gmra.mrb[4].mxu0 %vm1018_vm5, %v1302_v49  ;;  %1027 = vmatmul.mubr.msk.bf16.gmra.mrb[4].mxu1 %vm1018_vm5, %v1302_v49 }
  0xc1   :  { %378 = vmatprep.mubr.bf16.mxu0 %v1301_v0  ;;  %451 = vmatprep.mubr.bf16.mxu1 %v1301_v0 }
  0xc8   :  { %1021 = vmatmul.mubr.msk.bf16.gmra.mrb[8].mxu0 %vm1020_vm8, %v1302_v49  ;;  %1029 = vmatmul.mubr.msk.bf16.gmra.mrb[8].mxu1 %vm1020_vm8, %v1302_v49 }
  0xc9   :  { %388 = vmatprep.mubr.bf16.mxu0 %v1301_v0  ;;  %461 = vmatprep.mubr.bf16.mxu1 %v1301_v0  ;;  %v1471_v0 = vrot.slane %v144_v58, %v160_v60 }
  0xd0   :  { %1023 = vmatmul.mubr.msk.bf16.gmra.mrb[12].mxu0 %vm1022_vm11, %v1302_v49  ;;  %1031 = vmatmul.mubr.msk.bf16.gmra.mrb[12].mxu1 %vm1022_vm11, %v1302_v49 }
 0x18b   :  { %v360_v34 = vpop.f32.mrb[0].mxu0  ;;  %v433_v35 = vpop.f32.mrb[0].mxu1 }
 0x18c   :  { %v361_v36 = vadd.f32 %v360_v34, %v1465_v61  ;;  %v434_v37 = vadd.f32 %v433_v35, %v1467_v62  ;;  %v362_v38 = vpop.f32.mrb[1].mxu0  ;;  %v435_v39 = vpop.f32.mrb[1].mxu1 }
 0x18d   :  { %v363_v40 = vadd.f32 %v362_v38, %v1469_v63  ;;  %v436_v41 = vadd.f32 %v435_v39, %v1471_v0  ;;  %v364_v42 = vpop.f32.mrb[2].mxu0  ;;  %v437_v43 = vpop.f32.mrb[2].mxu1 }
 0x18e   :  { %v365_v44 = vadd.f32 %v364_v42, %v1465_v61  ;;  %v438_v45 = vadd.f32 %v437_v43, %v1467_v62  ;;  %v366_v46 = vpop.f32.mrb[3].mxu0  ;;  %v439_v47 = vpop.f32.mrb[3].mxu1 }
 0x18f   :  { %v1085_v48 = vpack.c.bf16 %v363_v40, %v361_v36  ;;  %v1086_v49 = vpack.c.bf16 %v436_v41, %v434_v37  ;;  %v367_v50 = vadd.f32 %v366_v46, %v1469_v63  ;;  %v440_v51 = vadd.f32 %v439_v47, %v1471_v0 }
 0x191   :  { %600 = vst [vmem:[#allocation2] sm:$0xff] %v1085_v48  ;;  %601 = vst [vmem:[#allocation2 + $0x8] sm:$0xff] %v1086_v49  ;;  %v1087_v52 = vpack.c.bf16 %v367_v50, %v365_v44  ;;  %v1088_v53 = vpack.c.bf16 %v440_v51, %v438_v45 }
 0x193   :  { %602 = vst [vmem:[#allocation2 + $0x10] sm:$0xff] %v1087_v52  ;;  %603 = vst [vmem:[#allocation2 + $0x18] sm:$0xff] %v1088_v53  ;;  %v370_v54 = vpop.f32.mrb[4].mxu0  ;;  %v443_v55 = vpop.f32.mrb[4].mxu1 }
 0x194   :  { %v371_v56 = vadd.f32 %v370_v54, %v1465_v61  ;;  %v444_v57 = vadd.f32 %v443_v55, %v1467_v62  ;;  %v372_v58 = vpop.f32.mrb[5].mxu0  ;;  %v445_v59 = vpop.f32.mrb[5].mxu1 }
 0x195   :  { %v373_v60 = vadd.f32 %v372_v58, %v1469_v63  ;;  %v446_v34 = vadd.f32 %v445_v59, %v1471_v0  ;;  %v374_v35 = vpop.f32.mrb[6].mxu0  ;;  %v447_v36 = vpop.f32.mrb[6].mxu1 }
 0x196   :  { %v375_v37 = vadd.f32 %v374_v35, %v1465_v61  ;;  %v448_v38 = vadd.f32 %v447_v36, %v1467_v62  ;;  %v376_v39 = vpop.f32.mrb[7].mxu0  ;;  %v449_v40 = vpop.f32.mrb[7].mxu1 }
 0x197   :  { %v1089_v41 = vpack.c.bf16 %v373_v60, %v371_v56  ;;  %v1090_v42 = vpack.c.bf16 %v446_v34, %v444_v57  ;;  %v377_v43 = vadd.f32 %v376_v39, %v1469_v63  ;;  %v450_v44 = vadd.f32 %v449_v40, %v1471_v0 }
 0x199   :  { %604 = vst [vmem:[#allocation2 + $0x20] sm:$0xff] %v1089_v41  ;;  %605 = vst [vmem:[#allocation2 + $0x28] sm:$0xff] %v1090_v42  ;;  %v1091_v45 = vpack.c.bf16 %v377_v43, %v375_v37  ;;  %v1092_v46 = vpack.c.bf16 %v450_v44, %v448_v38 }
 0x19b   :  { %606 = vst [vmem:[#allocation2 + $0x30] sm:$0xff] %v1091_v45  ;;  %607 = vst [vmem:[#allocation2 + $0x38] sm:$0xff] %v1092_v46  ;;  %v380_v47 = vpop.f32.mrb[8].mxu0  ;;  %v453_v48 = vpop.f32.mrb[8].mxu1 }
 0x19c   :  { %v381_v49 = vadd.f32 %v380_v47, %v1465_v61  ;;  %v454_v50 = vadd.f32 %v453_v48, %v1467_v62  ;;  %v382_v51 = vpop.f32.mrb[9].mxu0  ;;  %v455_v52 = vpop.f32.mrb[9].mxu1 }
 0x19d   :  { %v383_v53 = vadd.f32 %v382_v51, %v1469_v63  ;;  %v456_v54 = vadd.f32 %v455_v52, %v1471_v0  ;;  %v384_v55 = vpop.f32.mrb[10].mxu0  ;;  %v457_v56 = vpop.f32.mrb[10].mxu1 }
 0x19e   :  { %v385_v57 = vadd.f32 %v384_v55, %v1465_v61  ;;  %v458_v58 = vadd.f32 %v457_v56, %v1467_v62  ;;  %v386_v59 = vpop.f32.mrb[11].mxu0  ;;  %v459_v60 = vpop.f32.mrb[11].mxu1 }
 0x19f   :  { %v1093_v34 = vpack.c.bf16 %v383_v53, %v381_v49  ;;  %v1094_v35 = vpack.c.bf16 %v456_v54, %v454_v50  ;;  %v387_v36 = vadd.f32 %v386_v59, %v1469_v63  ;;  %v460_v37 = vadd.f32 %v459_v60, %v1471_v0 }
 0x1a0   :  { %v1505_v60 = vmov 0.0  }
 0x1a1   :  { %608 = vst [vmem:[#allocation2 + $0x40] sm:$0xff] %v1093_v34  ;;  %609 = vst [vmem:[#allocation2 + $0x48] sm:$0xff] %v1094_v35  ;;  %v1095_v38 = vpack.c.bf16 %v387_v36, %v385_v57  ;;  %v1096_v39 = vpack.c.bf16 %v460_v37, %v458_v58  ;;  %v1507_v34 = vmov 0.0  }
 0x1a3   :  { %610 = vst [vmem:[#allocation2 + $0x50] sm:$0xff] %v1095_v38  ;;  %611 = vst [vmem:[#allocation2 + $0x58] sm:$0xff] %v1096_v39  ;;  %v390_v40 = vpop.f32.mrb[12].mxu0  ;;  %v463_v41 = vpop.f32.mrb[12].mxu1 }
 0x1a4   :  { %v391_v42 = vadd.f32 %v390_v40, %v1465_v61  ;;  %v464_v43 = vadd.f32 %v463_v41, %v1467_v62  ;;  %v392_v44 = vpop.f32.mrb[13].mxu0  ;;  %v465_v45 = vpop.f32.mrb[13].mxu1 }
 0x1a5   :  { %v393_v46 = vadd.f32 %v392_v44, %v1469_v63  ;;  %v466_v47 = vadd.f32 %v465_v45, %v1471_v0  ;;  %v394_v48 = vpop.f32.mrb[14].mxu0  ;;  %v467_v49 = vpop.f32.mrb[14].mxu1 }
 0x1a6   :  { %v395_v50 = vadd.f32 %v394_v48, %v1465_v61  ;;  %v468_v51 = vadd.f32 %v467_v49, %v1467_v62  ;;  %v396_v52 = vpop.f32.mrb[15].mxu0  ;;  %v469_v53 = vpop.f32.mrb[15].mxu1 }
 0x1a7   :  { %v1097_v54 = vpack.c.bf16 %v393_v46, %v391_v42  ;;  %v1098_v55 = vpack.c.bf16 %v466_v47, %v464_v43  ;;  %v397_v56 = vadd.f32 %v396_v52, %v1469_v63  ;;  %v470_v57 = vadd.f32 %v469_v53, %v1471_v0 }
 0x1a9   :  { %612 = vst [vmem:[#allocation2 + $0x60] sm:$0xff] %v1097_v54  ;;  %613 = vst [vmem:[#allocation2 + $0x68] sm:$0xff] %v1098_v55  ;;  %v1099_v58 = vpack.c.bf16 %v397_v56, %v395_v50  ;;  %v1100_v59 = vpack.c.bf16 %v470_v57, %v468_v51 }
 0x1ab   :  { %614 = vst [vmem:[#allocation2 + $0x70] sm:$0xff] %v1099_v58  ;;  %615 = vst [vmem:[#allocation2 + $0x78] sm:$0xff] %v1100_v59 }
 0x1ac LB: > { %v1051_v61 = vcombine.high %v1368_v2, %v1372_v4  ;;  %v1050_v62 = vcombine.low %v1368_v2, %v1372_v4  ;;  %v1055_v63 = vcombine.high %v1376_v6, %v1380_v8  ;;  %v1053_v0 = vcombine.high %v1370_v3, %v1374_v5  ;;  %s1101_s10 = sshll.u32 %s1295_s4, 4  ;;  %s1295_s4 = sphi %s1509_s4, %s654_s4   ;;  %v1291_v34 = vphi %v1507_v34, %v1617_v34   ;;  %v1287_v60 = vphi %v1505_v60, %v945_v60  }
 0x1ad   : > { %v1052_v35 = vcombine.low %v1370_v3, %v1374_v5  ;;  %v1057_v36 = vcombine.high %v1378_v7, %v1382_v9  ;;  %v1054_v37 = vcombine.low %v1376_v6, %v1380_v8  ;;  %v1059_v38 = vcombine.high %v1384_v10, %v1388_v12  ;;  %s659_s11 = scalar_lea.vmem [#allocation2], %s1101_s10 }
 0x1ae   : > { %827 = vmatprep.subr.bf16.mxu0 %v1051_v61  ;;  %868 = vmatprep.subr.bf16.mxu1 %v1053_v0  ;;  %v1056_v39 = vcombine.low %v1378_v7, %v1382_v9  ;;  %v1061_v40 = vcombine.high %v1386_v11, %v1390_v13  ;;  %v1303_v41 = vmov 0   ;;  %v1058_v42 = vcombine.low %v1384_v10, %v1388_v12 }
 0x1af   : > { %828 = vmatpush1.bf16.msra.mxu0 %v1050_v62  ;;  %869 = vmatpush1.bf16.msra.mxu1 %v1052_v35  ;;  %v1063_v43 = vcombine.high %v1392_v14, %v1396_v16  ;;  %v1060_v44 = vcombine.low %v1386_v11, %v1390_v13  ;;  %v937_v45 = vstv %s1295_s4  ;;  %v1065_v46 = vcombine.high %v1394_v15, %v1398_v17  ;;  %s654_s4 = sadd.s32 1, %s1295_s4  }
 0x1b0   : > { %829 = vmatprep.subr.bf16.mxu0 %v1055_v63  ;;  %870 = vmatprep.subr.bf16.mxu1 %v1057_v36  ;;  %vm938_vm12 = vcmp.lt.s32.totalorder %v937_v45, %v1366_v1  ;;  %v1062_v48 = vcombine.low %v1392_v14, %v1396_v16  ;;  %v1067_v49 = vcombine.high %v1400_v18, %v1404_v20  ;;  %p651_p2 = scmp.ge.s32.totalorder %s654_s4, 8  }
 0x1b1   : > { %859 = vmatprep.mubr.bf16.mxu0 %v1303_v41  ;;  %900 = vmatprep.mubr.bf16.mxu1 %v1303_v41  ;;  %v939_v47 = vsel %vm938_vm12, 1, %v1303_v41  ;;  %v1064_v50 = vcombine.low %v1394_v15, %v1398_v17  ;;  %v1069_v51 = vcombine.high %v1402_v19, %v1406_v21  ;;  %v1066_v52 = vcombine.low %v1400_v18, %v1404_v20  ;;  %s1304_s12 = smov (%p651_p2), [#allocation8]  }
 0x1b2   : > { %1184 = vset.pattern.permute.xlu0 %v1303_v41  ;;  %v1071_v53 = vcombine.high %v1408_v22, %v1412_v24  ;;  %v1068_v54 = vcombine.low %v1402_v19, %v1406_v21  ;;  %v1073_v55 = vcombine.high %v1410_v23, %v1414_v25  ;;  %v1070_v56 = vcombine.low %v1408_v22, %v1412_v24  ;;  %s953_s13 = sshll.u32 (%p651_p2), %s1304_s12, 4  ;;  %s954_s13 = int_to_ptr.vmem [resolvable:$true] %s953_s13 }
 0x1b3   : > { %830 = vmatpush1.bf16.msra.mxu0 %v1054_v37  ;;  %871 = vmatpush1.bf16.msra.mxu1 %v1056_v39  ;;  %v1075_v57 = vcombine.high %v1416_v26, %v1420_v28  ;;  %v1072_v58 = vcombine.low %v1410_v23, %v1414_v25  ;;  %v1077_v59 = vcombine.high %v1418_v27, %v1422_v29  ;;  %v661_v39 = vld [vmem:[%s659_s11 + $0x8] sm:$0xff]  ;;  %s1245_s14 = scalar_lea.vmem (%p651_p2), %s954_s13, 128  ;;  %p1250_p4 = scmp.lt.s32.totalorder (%p651_p2), %s954_s13, %s954_s13 }
 0x1b4   : > { %831 = vmatprep.subr.bf16.mxu0 %v1059_v38  ;;  %872 = vmatprep.subr.bf16.mxu1 %v1061_v40  ;;  %v1074_v61 = vcombine.low %v1416_v26, %v1420_v28  ;;  %v1079_v62 = vcombine.high %v1424_v30, %v1428_v32  ;;  %v1076_v63 = vcombine.low %v1418_v27, %v1422_v29  ;;  %v660_v38 = vld [vmem:[%s659_s11] sm:$0xff]  ;;  %p1246_p3 = scmp.ne.s32.totalorder (%p651_p2), %s954_s13, %s1245_s14  ;;  %p1251_p5 = scmp.lt.s32.totalorder (%p651_p2), %s1245_s14, %s1245_s14 }
 0x1b5   : > { %941 = vperm.xlu0 %1184, %v939_v47   ;;  %v1081_v0 = vcombine.high %v1426_v31, %v1430_v33  ;;  %v1078_v35 = vcombine.low %v1424_v30, %v1428_v32  ;;  %v1080_v36 = vcombine.low %v1426_v31, %v1430_v33  ;;  %v666_v37 = vpack.c.bf16 %v1291_v34, %v1291_v34 }
 0x1b6   : > { %v662_v40 = vunpack.c.l.bf16 %v660_v38  ;;  %v663_v41 = vunpack.c.h.bf16 %v660_v38  ;;  %p1252_p6 = por (%p651_p2), %p1251_p5, %p1250_p4 }
 0x1b7   : > { %832 = vmatpush1.bf16.msra.mxu0 %v1058_v42  ;;  %873 = vmatpush1.bf16.msra.mxu1 %v1060_v44  ;;  %v664_v42 = vunpack.c.l.bf16 %v661_v39 }
 0x1b8   : > { %833 = vmatprep.subr.bf16.mxu0 %v1063_v43  ;;  %874 = vmatprep.subr.bf16.mxu1 %v1065_v46  ;;  %v665_v43 = vunpack.c.h.bf16 %v661_v39  ;;  %p1253_p7 = pnand (%p651_p2), %p1252_p6, %p1246_p3 }
 0x1bb   : > { %834 = vmatpush1.bf16.msra.mxu0 %v1062_v48  ;;  %875 = vmatpush1.bf16.msra.mxu1 %v1064_v50 }
 0x1bc   : > { %835 = vmatprep.subr.bf16.mxu0 %v1067_v49  ;;  %876 = vmatprep.subr.bf16.mxu1 %v1069_v51 }
 0x1bf   : > { %836 = vmatpush1.bf16.msra.mxu0 %v1066_v52  ;;  %877 = vmatpush1.bf16.msra.mxu1 %v1068_v54 }
 0x1c0   : > { %837 = vmatprep.subr.bf16.mxu0 %v1071_v53  ;;  %878 = vmatprep.subr.bf16.mxu1 %v1073_v55 }
 0x1c3   : > { %838 = vmatpush1.bf16.msra.mxu0 %v1070_v56  ;;  %879 = vmatpush1.bf16.msra.mxu1 %v1072_v58 }
 0x1c4   : > { %839 = vmatprep.subr.bf16.mxu0 %v1075_v57  ;;  %880 = vmatprep.subr.bf16.mxu1 %v1077_v59 }
 0x1c7   : > { %840 = vmatpush1.bf16.msra.mxu0 %v1074_v61  ;;  %881 = vmatpush1.bf16.msra.mxu1 %v1076_v63 }
 0x1c8   : > { %841 = vmatprep.subr.bf16.mxu0 %v1079_v62  ;;  %882 = vmatprep.subr.bf16.mxu1 %v1081_v0 }
 0x1cb   : > { %842 = vmatpush1.bf16.msra.mxu0 %v1078_v35  ;;  %883 = vmatpush1.bf16.msra.mxu1 %v1080_v36 }
 0x1ce   : > { %860 = vmatmul.mubr.bf16.vlgmr.msra.gmra.mrb[0].mxu0 %v666_v37  ;;  %901 = vmatmul.mubr.bf16.vlgmr.msra.gmra.mrb[0].mxu1 %v666_v37 }
 0x234   : > { %v942_v38 = vpop.permute.xlu0 %941 }
 0x235   : > { %vm943_vm13 = vcmp.eq.s32.totalorder %v942_v38, 1 }
 0x2a1   : > { %v861_v44 = vpop.f32.mrb[0].mxu0  ;;  %v902_v47 = vpop.f32.mrb[0].mxu1 }
 0x2a2   : > { %v909_v45 = vadd.f32 %v861_v44, %v662_v40  ;;  %v863_v46 = vpop.f32.mrb[1].mxu0  ;;  %v911_v50 = vadd.f32 %v902_v47, %v664_v42  ;;  %v904_v51 = vpop.f32.mrb[1].mxu1 }
 0x2a3   : > { %v910_v48 = vadd.f32 %v863_v46, %v663_v41  ;;  %v865_v49 = vpop.f32.mrb[2].mxu0  ;;  %v912_v54 = vadd.f32 %v904_v51, %v665_v43  ;;  %v906_v55 = vpop.f32.mrb[2].mxu1 }
 0x2a4   : > { %v1082_v52 = vmul.f32 -1.442695, %v909_v45  ;;  %v866_v53 = vpop.f32.mrb[3].mxu0  ;;  %v907_v57 = vpop.f32.mrb[3].mxu1  ;;  %v1084_v58 = vmul.f32 -1.442695, %v911_v50 }
 0x2a5   : > { %v1083_v56 = vmul.f32 -1.442695, %v910_v48 }
 0x2a6   : > { %1185 = vpow2.f32 %v1082_v52 }
 0x2a7   : > { %1187 = vpow2.f32 %v1083_v56 }
 0x2a8   : > { %1189 = vpow2.f32 %v1084_v58 }
 0x2a9   : > { %1191 = vtanh.f32 %v912_v54 }
 0x2b0   : > { %v1186_v59 = vpop.eup %1185 }
 0x2b1   : > { %v1188_v61 = vpop.eup %1187  ;;  %v922_v62 = vadd.f32 1.0, %v1186_v59 }
 0x2b2   : > { %v923_v63 = vadd.f32 1.0, %v1188_v61  ;;  %v1190_v0 = vpop.eup %1189 }
 0x2b3   : > { %1193 = vrcp.f32 %v922_v62  ;;  %v1192_v35 = vpop.eup %1191  ;;  %v924_v37 = vadd.f32 1.0, %v1190_v0 }
 0x2b4   : > { %1195 = vrcp.f32 %v923_v63 }
 0x2b5   : > { %1197 = vrcp.f32 %v924_v37 }
 0x2bd   : > { %v1194_v36 = vpop.eup %1193 }
 0x2be   : > { %v1196_v39 = vpop.eup %1195  ;;  %v933_v40 = vmul.f32 %v1194_v36, %v1192_v35 }
 0x2bf   : > { %v932_v41 = vmul.f32 %v1287_v60, %v1196_v39  ;;  %v1198_v43 = vpop.eup %1197 }
 0x2c1   : > { %v934_v42 = vadd.f32 %v933_v40, %v932_v41 }
 0x2c3   : > { %1199 = vtanh.f32 %v934_v42  ;;  %v945_v60 = vsel %vm943_vm13, %v934_v42, %v1287_v60  }
 0x2cb   :  { %653 = sbr.rel (!%p651_p2) target bundleno = 428 (0x1ac), region = 56 }
 0x2cd   : > { %v1200_v44 = vpop.eup %1199 }
 0x2ce   : > { %v936_v45 = vmul.f32 %v1200_v44, %v1198_v43 }
 0x2d0   : > { %v944_v46 = vsel %vm943_vm13, %v936_v45, %v1291_v34  }
 0x2d1   : > { %v1617_v34 = vmov %v944_v46  ;;  %946 = vst [vmem:[#allocation8] sm:$0xff] (%p651_p2), %v944_v46 }
 0x2d2   :  { %1256 = shalt.err (!%p1253_p7)
}
 0x2d3   :  { %s1257_s2 = scalar_lea.hbm %s1616_s5, 128 }
 0x2d4   :  { %p1258_p8 = scmp.ne.s32.totalorder %s1616_s5, %s1257_s2  ;;  %p1261_p9 = scmp.lt.u32.totalorder %s1257_s2, %s1616_s5 }
 0x2d6   :  { %p1263_p10 = pnand %p1261_p9, %p1258_p8 }
 0x2d8   :  { %1266 = shalt.err (!%p1263_p10)
}
 0x2d9   :  { %956 = dma.vmem_to_hbm [thread:$0]  %s954_s13, 128, %s1616_s5, [#allocation5]  }
 0x2da   :  { %1283 = dma.done.wait [#allocation5], 128  }
 0x2db   :  { %1284 = vsyncadd [#allocation5], 4294967168 }
 0x2dc   :  { %960 = vsyncpa [#allocation4], 1 }
 0x2dd   :  { %961 = vsyncpa [#allocation7], 1 }
 0x2de   :  { %962 = vsyncpa [#allocation5], 1 }

</bundles_post_ra>
